<compile_context>
chip_gen: v5e
topology: v5e:2x2
jax: 0.10.0
libtpu: 0.0.40
codegen_flags: <defaults>
</compile_context>

<pallas_src>
import jax
import jax.numpy as jnp
from jax.experimental import pallas as pl
from jax.experimental.pallas import tpu as pltpu

_SUBLANE_BF16 = 16   # bf16 packs 16 sublanes/vreg; batch tiles rounded to this


def _round_up(n, m):
    return ((n + m - 1) // m) * m


def _pad_feature(d):
    # <=128 -> 128 lanes (don't blow up tiny ENAS dims like 10); >128 -> pad to
    # a 256 multiple so the 2x256^2 MXU on v6e/v7x is fed full tiles.
    return 128 if d <= 128 else _round_up(d, 256)


def _make_mlp_kernel(n_hidden_layers: int, compute_dtype):
    """Fused MLP kernel for a fixed layer count.

    Ref order: x, (w0, b0), ..., (w_out, b_out), out
      w_l: (K_pad, N_pad) pre-transposed, compute_dtype
      b_l: (1, N_pad) float32
    """
    n_layers = n_hidden_layers + 1

    def kernel(*refs):
        x_ref = refs[0]
        out_ref = refs[-1]
        params = refs[1:-1]

        h = x_ref[...]                                   # (TM, F0_pad) compute_dtype
        for layer in range(n_layers):
            w = params[2 * layer][...]                   # (K_pad, N_pad) compute_dtype
            b = params[2 * layer + 1][...]               # (1, N_pad) f32
            # RHS already (K, N) -> no in-kernel transpose; f32 accumulation.
            acc = jax.lax.dot_general(
                h, w, dimension_numbers=(((1,), (0,)), ((), ())),
                preferred_element_type=jnp.float32)
            z = acc + b                                  # bias add in f32 (VPU)
            if layer < n_hidden_layers:
                # ReLU in f32, then a single cast for the next dot; keeps the
                # live (TM, N_pad) activation in compute_dtype (half the vregs).
                h = jnp.maximum(z, 0.0).astype(compute_dtype)
            else:
                out_ref[...] = z.astype(out_ref.dtype)   # no output activation

    return kernel


def pack_params(hidden_params, output_params, *, compute_dtype=jnp.bfloat16):
    """One-time packing: transpose to (in,out), zero-pad to lane multiples, cast.

    Call once; the returned pytree is reused by every mlp_forward call, so no
    per-step transpose/pad/cast XLA ops or HBM traffic precede the kernel.
    """
    all_params = list(hidden_params) + [output_params]
    n_inputs = all_params[0][0].shape[1]
    dims = [n_inputs] + [w.shape[0] for w, _ in all_params]
    pdims = [_pad_feature(d) for d in dims]

    packed = []
    for li, (w, b) in enumerate(all_params):
        k_pad, n_pad = pdims[li], pdims[li + 1]
        w_p = jnp.zeros((k_pad, n_pad), compute_dtype)
        w_p = w_p.at[:w.shape[1], :w.shape[0]].set(w.T.astype(compute_dtype))
        b_p = jnp.zeros((1, n_pad), jnp.float32)
        b_p = b_p.at[0, :b.shape[0]].set(b.astype(jnp.float32))
        packed.append((w_p, b_p))

    return {
        "params": packed,
        "dims": tuple(dims),
        "pdims": tuple(pdims),
        "n_hidden_layers": len(hidden_params),
        "compute_dtype": compute_dtype,
    }


def mlp_forward(x, packed, *, block_batch=512, out_dtype=jnp.float32):
    """Run the fused MLP Pallas kernel on pre-packed parameters.

    Args:
      x: (batch, n_inputs) float32 (cast to compute_dtype for the DMA).
      packed: output of pack_params().
      block_batch: target batch tile (rounded to a multiple of 16).
      out_dtype: output dtype (f32 default; bf16 OK if downstream allows).
    Returns:
      (batch, n_outputs) array of out_dtype.
    """
    compute_dtype = packed["compute_dtype"]
    n_hidden_layers = packed["n_hidden_layers"]
    dims, pdims = packed["dims"], packed["pdims"]
    n_layers = n_hidden_layers + 1

    batch, n_inputs = x.shape
    assert n_inputs == dims[0], "input width mismatch vs packed params"
    n_outputs = dims[-1]
    in_pad, out_pad = pdims[0], pdims[-1]

    # Batch tiling: multiple of 16 (bf16 sublane packing); prefer >= 2 grid
    # steps so the 'parallel' axis can shard across both v7x TensorCores.
    batch16 = _round_up(batch, _SUBLANE_BF16)
    tm = min(_round_up(block_batch, _SUBLANE_BF16), batch16)
    if tm >= batch16 and batch16 >= 2 * _SUBLANE_BF16:
        tm = _round_up(pl.cdiv(batch16, 2), _SUBLANE_BF16)
    batch_pad = _round_up(batch, tm)
    grid = (batch_pad // tm,)

    # Activations stream in compute_dtype -> halves the only per-tile HBM traffic.
    x_p = jnp.zeros((batch_pad, in_pad), compute_dtype)
    x_p = x_p.at[:batch, :n_inputs].set(x.astype(compute_dtype))

    flat_args = [x_p]
    for w_p, b_p in packed["params"]:
        flat_args += [w_p, b_p]

    kernel = _make_mlp_kernel(n_hidden_layers, compute_dtype)

    # Cost estimate so XLA schedules around the custom call.
    flops = 2 * batch_pad * sum(pdims[i] * pdims[i + 1] for i in range(n_layers))
    bytes_accessed = (sum(a.size * a.dtype.itemsize for a in flat_args)
                      + batch_pad * out_pad * jnp.dtype(out_dtype).itemsize)
    cost = pl.CostEstimate(flops=flops, transcendentals=0,
                           bytes_accessed=bytes_accessed)

    # Explicit VMEM budget (weights resident + double-buffered activations).
    param_bytes = sum(a.size * a.dtype.itemsize for a in flat_args[1:])
    act_bytes = (2 * tm * in_pad * jnp.dtype(compute_dtype).itemsize
                 + 2 * tm * out_pad * jnp.dtype(out_dtype).itemsize
                 + 2 * tm * max(pdims) * 4)              # live h/acc headroom
    needed = 2 * param_bytes + act_bytes                 # conservative (2x bufs)
    try:
        phys_vmem = int(pltpu.get_tpu_info().vmem_capacity_bytes)
    except Exception:
        phys_vmem = 64 << 20                             # v7x per-TC lower bound
    vmem_limit = int(min(phys_vmem, max(needed + (8 << 20), 32 << 20)))
    # TODO(synk): for ENAS configs whose packed weights exceed the per-TC VMEM
    # budget (esp. v7x 64 MiB), add a layer-/K-tiled fallback grid with an
    # accumulator scratch instead of keeping all weights VMEM-resident.

    compiler_params = pltpu.CompilerParams(
        dimension_semantics=("parallel",),
        vmem_limit_bytes=vmem_limit)

    def _build_in_specs(single_buffer_params):
        specs = [pl.BlockSpec((tm, in_pad), lambda i: (i, 0))]   # x: pipelined
        for li in range(n_layers):
            k_pad, n_pad = pdims[li], pdims[li + 1]
            if single_buffer_params:
                # Constant blocks -> single buffer halves resident param VMEM.
                specs += [pl.BlockSpec((k_pad, n_pad), lambda i: (0, 0),
                                       pipeline_mode=pl.Buffered(1)),
                          pl.BlockSpec((1, n_pad), lambda i: (0, 0),
                                       pipeline_mode=pl.Buffered(1))]
            else:
                specs += [pl.BlockSpec((k_pad, n_pad), lambda i: (0, 0)),
                          pl.BlockSpec((1, n_pad), lambda i: (0, 0))]
        return specs

    def _call(single_buffer_params):
        return pl.pallas_call(
            kernel,
            out_shape=jax.ShapeDtypeStruct((batch_pad, out_pad), out_dtype),
            grid=grid,
            in_specs=_build_in_specs(single_buffer_params),
            out_specs=pl.BlockSpec((tm, out_pad), lambda i: (i, 0)),
            compiler_params=compiler_params,
            cost_estimate=cost,
        )(*flat_args)

    try:
        out_padded = _call(True)
    except Exception:
        # pipeline_mode=pl.Buffered(1) unsupported on this jax build; fall back
        # to default double-buffering (identical numerics, ~2x param VMEM).
        out_padded = _call(False)

    return out_padded[:batch, :n_outputs]


def init_params(key, n_inputs, n_outputs, n_hidden_nodes, n_hidden_layers):
    """Deterministic parameter init matching the nn.Module's shapes."""
    hidden_params = []
    in_dim = n_inputs
    for _ in range(n_hidden_layers):
        key, kw, kb = jax.random.split(key, 3)
        w = jax.random.normal(kw, (n_hidden_nodes, in_dim), jnp.float32) * 0.1
        b = jax.random.normal(kb, (n_hidden_nodes,), jnp.float32) * 0.1
        hidden_params.append((w, b))
        in_dim = n_hidden_nodes
    key, kw, kb = jax.random.split(key, 3)
    w_o = jax.random.normal(kw, (n_outputs, in_dim), jnp.float32) * 0.1
    b_o = jax.random.normal(kb, (n_outputs,), jnp.float32) * 0.1
    return hidden_params, (w_o, b_o)


def reference_forward(x, hidden_params, output_params):
    """Plain-JAX f32 reference mirroring the PyTorch forward."""
    h = x
    for w, b in hidden_params:
        h = jnp.maximum(h @ w.T + b, 0.0)
    w_o, b_o = output_params
    return h @ w_o.T + b_o


if __name__ == "__main__":
    # Module defaults: n_inputs=2, n_outputs=1, n_hidden_nodes=10, n_hidden_layers=1
    n_inputs, n_outputs, n_hidden_nodes, n_hidden_layers = 2, 1, 10, 1
    batch = 24

    key = jax.random.PRNGKey(0)
    key, kx = jax.random.split(key)
    x = jax.random.normal(kx, (batch, n_inputs), jnp.float32)

    hidden_params, output_params = init_params(
        key, n_inputs, n_outputs, n_hidden_nodes, n_hidden_layers)

    # Pack once (transpose / lane-pad / bf16 cast); reuse for every forward.
    packed = pack_params(hidden_params, output_params)

    # batch=24 -> tm=16, grid=(2,): exercises the >=2-step parallel batch grid.
    out = mlp_forward(x, packed)
    out = jax.block_until_ready(out)

    ref = reference_forward(x, hidden_params, output_params)
    assert out.shape == (batch, n_outputs)
    # bf16 MXU inputs/activations with f32 accumulation vs f32 reference.
    assert jnp.allclose(out, ref, atol=1e-2, rtol=1e-2), "mismatch vs reference"

    print("KERNEL_OK")
</pallas_src>

<mosaic_0001>
module attributes {stable_mosaic.version = 11 : i64} {
  func.func @kernel(%arg0: i32, %arg1: memref<16x128xbf16, #tpu.memory_space<vmem>>, %arg2: memref<128x128xbf16, #tpu.memory_space<vmem>>, %arg3: memref<1x128xf32, #tpu.memory_space<vmem>>, %arg4: memref<128x128xbf16, #tpu.memory_space<vmem>>, %arg5: memref<1x128xf32, #tpu.memory_space<vmem>>, %arg6: memref<16x128xf32, #tpu.memory_space<vmem>>) attributes {dimension_semantics = [#tpu.dimension_semantics<parallel>], iteration_bounds = array<i64: 2>, scalar_prefetch = 0 : i64, scratch_operands = 0 : i64, tpu.core_type = #tpu.core_type<tc>, window_params = [{transform_indices = @transform_0, window_bounds = array<i64: 16, 128>}, {pipeline_mode = #tpu.pipeline_mode<synchronous>, transform_indices = @transform_1, window_bounds = array<i64: 128, 128>}, {pipeline_mode = #tpu.pipeline_mode<synchronous>, transform_indices = @transform_2, window_bounds = array<i64: 1, 128>}, {pipeline_mode = #tpu.pipeline_mode<synchronous>, transform_indices = @transform_3, window_bounds = array<i64: 128, 128>}, {pipeline_mode = #tpu.pipeline_mode<synchronous>, transform_indices = @transform_4, window_bounds = array<i64: 1, 128>}, {transform_indices = @transform_5, window_bounds = array<i64: 16, 128>}]} {
    %c0 = arith.constant 0 : index
    %c0_0 = arith.constant 0 : index
    %0 = vector.load %arg1[%c0, %c0_0] : memref<16x128xbf16, #tpu.memory_space<vmem>>, vector<16x128xbf16>
    %c0_1 = arith.constant 0 : index
    %c0_2 = arith.constant 0 : index
    %1 = vector.load %arg2[%c0_1, %c0_2] : memref<128x128xbf16, #tpu.memory_space<vmem>>, vector<128x128xbf16>
    %c0_3 = arith.constant 0 : index
    %c0_4 = arith.constant 0 : index
    %2 = vector.load %arg3[%c0_3, %c0_4] : memref<1x128xf32, #tpu.memory_space<vmem>>, vector<1x128xf32>
    %cst = arith.constant dense<0.000000e+00> : vector<16x128xf32>
    %3 = tpu.matmul %0, %1, %cst {dimension_numbers = #tpu.dot_dimension_numbers<[1], [0], [0], [1], [0, 0, 1, 1], [], []>} : vector<16x128xbf16>, vector<128x128xbf16>, vector<16x128xf32> -> vector<16x128xf32>
    %4 = vector.broadcast %2 : vector<1x128xf32> to vector<16x128xf32>
    %5 = arith.addf %3, %4 : vector<16x128xf32>
    %cst_5 = arith.constant 0.000000e+00 : f32
    %6 = vector.broadcast %cst_5 : f32 to vector<16x128xf32>
    %7 = arith.maximumf %5, %6 : vector<16x128xf32>
    %8 = arith.truncf %7 : vector<16x128xf32> to vector<16x128xbf16>
    %c0_6 = arith.constant 0 : index
    %c0_7 = arith.constant 0 : index
    %9 = vector.load %arg4[%c0_6, %c0_7] : memref<128x128xbf16, #tpu.memory_space<vmem>>, vector<128x128xbf16>
    %c0_8 = arith.constant 0 : index
    %c0_9 = arith.constant 0 : index
    %10 = vector.load %arg5[%c0_8, %c0_9] : memref<1x128xf32, #tpu.memory_space<vmem>>, vector<1x128xf32>
    %cst_10 = arith.constant dense<0.000000e+00> : vector<16x128xf32>
    %11 = tpu.matmul %8, %9, %cst_10 {dimension_numbers = #tpu.dot_dimension_numbers<[1], [0], [0], [1], [0, 0, 1, 1], [], []>} : vector<16x128xbf16>, vector<128x128xbf16>, vector<16x128xf32> -> vector<16x128xf32>
    %12 = vector.broadcast %10 : vector<1x128xf32> to vector<16x128xf32>
    %13 = arith.addf %11, %12 : vector<16x128xf32>
    %c0_11 = arith.constant 0 : index
    %c0_12 = arith.constant 0 : index
    %14 = vector.load %arg6[%c0_11, %c0_12] : memref<16x128xf32, #tpu.memory_space<vmem>>, vector<16x128xf32>
    tpu.vector_store %arg6[%c0_11, %c0_12], %13 {strides = array<i32>} : memref<16x128xf32, #tpu.memory_space<vmem>>, vector<16x128xf32>,
    return
  }
  func.func @transform_0(%arg0: i32) -> (i32, i32) {
    %c0_i32 = arith.constant 0 : i32
    %c0_i32_0 = arith.constant 0 : i32
    return %arg0, %c0_i32 : i32, i32
  }
  func.func @transform_1(%arg0: i32) -> (i32, i32) {
    %c0_i32 = arith.constant 0 : i32
    %c0_i32_0 = arith.constant 0 : i32
    %c0_i32_1 = arith.constant 0 : i32
    return %c0_i32, %c0_i32_0 : i32, i32
  }
  func.func @transform_2(%arg0: i32) -> (i32, i32) {
    %c0_i32 = arith.constant 0 : i32
    %c0_i32_0 = arith.constant 0 : i32
    %c0_i32_1 = arith.constant 0 : i32
    return %c0_i32, %c0_i32_0 : i32, i32
  }
  func.func @transform_3(%arg0: i32) -> (i32, i32) {
    %c0_i32 = arith.constant 0 : i32
    %c0_i32_0 = arith.constant 0 : i32
    %c0_i32_1 = arith.constant 0 : i32
    return %c0_i32, %c0_i32_0 : i32, i32
  }
  func.func @transform_4(%arg0: i32) -> (i32, i32) {
    %c0_i32 = arith.constant 0 : i32
    %c0_i32_0 = arith.constant 0 : i32
    %c0_i32_1 = arith.constant 0 : i32
    return %c0_i32, %c0_i32_0 : i32, i32
  }
  func.func @transform_5(%arg0: i32) -> (i32, i32) {
    %c0_i32 = arith.constant 0 : i32
    %c0_i32_0 = arith.constant 0 : i32
    return %arg0, %c0_i32 : i32, i32
  }
}

module attributes {stable_mosaic.version = 11 : i64} {
  func.func @kernel(%arg0: i32, %arg1: memref<16x128xbf16, #tpu.memory_space<vmem>>, %arg2: memref<128x128xbf16, #tpu.memory_space<vmem>>, %arg3: memref<1x128xf32, #tpu.memory_space<vmem>>, %arg4: memref<128x128xbf16, #tpu.memory_space<vmem>>, %arg5: memref<1x128xf32, #tpu.memory_space<vmem>>, %arg6: memref<16x128xf32, #tpu.memory_space<vmem>>) attributes {dimension_semantics = [#tpu.dimension_semantics<parallel>], iteration_bounds = array<i64: 2>, scalar_prefetch = 0 : i64, scratch_operands = 0 : i64, tpu.core_type = #tpu.core_type<tc>, window_params = [{transform_indices = @transform_0, window_bounds = array<i64: 16, 128>}, {pipeline_mode = #tpu.pipeline_mode<synchronous>, transform_indices = @transform_1, window_bounds = array<i64: 128, 128>}, {pipeline_mode = #tpu.pipeline_mode<synchronous>, transform_indices = @transform_2, window_bounds = array<i64: 1, 128>}, {pipeline_mode = #tpu.pipeline_mode<synchronous>, transform_indices = @transform_3, window_bounds = array<i64: 128, 128>}, {pipeline_mode = #tpu.pipeline_mode<synchronous>, transform_indices = @transform_4, window_bounds = array<i64: 1, 128>}, {transform_indices = @transform_5, window_bounds = array<i64: 16, 128>}]} {
    %c0 = arith.constant 0 : index
    %c0_0 = arith.constant 0 : index
    %0 = vector.load %arg1[%c0, %c0_0] : memref<16x128xbf16, #tpu.memory_space<vmem>>, vector<16x128xbf16>
    %c0_1 = arith.constant 0 : index
    %c0_2 = arith.constant 0 : index
    %1 = vector.load %arg2[%c0_1, %c0_2] : memref<128x128xbf16, #tpu.memory_space<vmem>>, vector<128x128xbf16>
    %c0_3 = arith.constant 0 : index
    %c0_4 = arith.constant 0 : index
    %2 = vector.load %arg3[%c0_3, %c0_4] : memref<1x128xf32, #tpu.memory_space<vmem>>, vector<1x128xf32>
    %cst = arith.constant dense<0.000000e+00> : vector<16x128xf32>
    %3 = tpu.matmul %0, %1, %cst {dimension_numbers = #tpu.dot_dimension_numbers<[1], [0], [0], [1], [0, 0, 1, 1], [], []>} : vector<16x128xbf16>, vector<128x128xbf16>, vector<16x128xf32> -> vector<16x128xf32>
    %4 = vector.broadcast %2 : vector<1x128xf32> to vector<16x128xf32>
    %5 = arith.addf %3, %4 : vector<16x128xf32>
    %cst_5 = arith.constant 0.000000e+00 : f32
    %6 = vector.broadcast %cst_5 : f32 to vector<16x128xf32>
    %7 = arith.maximumf %5, %6 : vector<16x128xf32>
    %8 = arith.truncf %7 : vector<16x128xf32> to vector<16x128xbf16>
    %c0_6 = arith.constant 0 : index
    %c0_7 = arith.constant 0 : index
    %9 = vector.load %arg4[%c0_6, %c0_7] : memref<128x128xbf16, #tpu.memory_space<vmem>>, vector<128x128xbf16>
    %c0_8 = arith.constant 0 : index
    %c0_9 = arith.constant 0 : index
    %10 = vector.load %arg5[%c0_8, %c0_9] : memref<1x128xf32, #tpu.memory_space<vmem>>, vector<1x128xf32>
    %cst_10 = arith.constant dense<0.000000e+00> : vector<16x128xf32>
    %11 = tpu.matmul %8, %9, %cst_10 {dimension_numbers = #tpu.dot_dimension_numbers<[1], [0], [0], [1], [0, 0, 1, 1], [], []>} : vector<16x128xbf16>, vector<128x128xbf16>, vector<16x128xf32> -> vector<16x128xf32>
    %12 = vector.broadcast %10 : vector<1x128xf32> to vector<16x128xf32>
    %13 = arith.addf %11, %12 : vector<16x128xf32>
    %c0_11 = arith.constant 0 : index
    %c0_12 = arith.constant 0 : index
    %14 = vector.load %arg6[%c0_11, %c0_12] : memref<16x128xf32, #tpu.memory_space<vmem>>, vector<16x128xf32>
    tpu.vector_store %arg6[%c0_11, %c0_12], %13 {strides = array<i32>} : memref<16x128xf32, #tpu.memory_space<vmem>>, vector<16x128xf32>,
    return
  }
  func.func @transform_0(%arg0: i32) -> (i32, i32) {
    %c0_i32 = arith.constant 0 : i32
    %c0_i32_0 = arith.constant 0 : i32
    return %arg0, %c0_i32 : i32, i32
  }
  func.func @transform_1(%arg0: i32) -> (i32, i32) {
    %c0_i32 = arith.constant 0 : i32
    %c0_i32_0 = arith.constant 0 : i32
    %c0_i32_1 = arith.constant 0 : i32
    return %c0_i32, %c0_i32_0 : i32, i32
  }
  func.func @transform_2(%arg0: i32) -> (i32, i32) {
    %c0_i32 = arith.constant 0 : i32
    %c0_i32_0 = arith.constant 0 : i32
    %c0_i32_1 = arith.constant 0 : i32
    return %c0_i32, %c0_i32_0 : i32, i32
  }
  func.func @transform_3(%arg0: i32) -> (i32, i32) {
    %c0_i32 = arith.constant 0 : i32
    %c0_i32_0 = arith.constant 0 : i32
    %c0_i32_1 = arith.constant 0 : i32
    return %c0_i32, %c0_i32_0 : i32, i32
  }
  func.func @transform_4(%arg0: i32) -> (i32, i32) {
    %c0_i32 = arith.constant 0 : i32
    %c0_i32_0 = arith.constant 0 : i32
    %c0_i32_1 = arith.constant 0 : i32
    return %c0_i32, %c0_i32_0 : i32, i32
  }
  func.func @transform_5(%arg0: i32) -> (i32, i32) {
    %c0_i32 = arith.constant 0 : i32
    %c0_i32_0 = arith.constant 0 : i32
    return %arg0, %c0_i32 : i32, i32
  }
}

</mosaic_0001>

<bundles_post_ra>
// kernel: tpu_custom_call.1
= control target key start
LH: loop header
LB: loop body
LE: loop exit
PB: predicated region body
PF: predicated region fallthrough
CT: control target
= control target key end

     0   :  { %10 = vsyncpa [#allocation3], 0  ;;  %s1098_s0 = inlined_call_operand.hbm [shape: bf16[32,128], index: 0, kind: input, shape index: {}]   ;;  %s1099_s1 = inlined_call_operand.hbm [shape: bf16[128,128], index: 1, kind: input, shape index: {}]   ;;  %s1100_s2 = inlined_call_operand.vmem [shape: f32[1,128], index: 2, kind: input, shape index: {}]   ;;  %s1101_s3 = inlined_call_operand.hbm [shape: bf16[128,128], index: 3, kind: input, shape index: {}]   ;;  %s1102_s4 = inlined_call_operand.vmem [shape: f32[1,128], index: 4, kind: input, shape index: {}]   ;;  %s1103_s5 = inlined_call_operand.hbm [shape: f32[32,128], index: 5, kind: output, shape index: {}]  }
   0x1   :  { %12 = vsyncpa [#allocation3 + $0x1], 0 }
   0x2   :  { %13 = vsyncpa [#allocation6], 0 }
   0x3   :  { %14 = vsyncpa [#allocation4], 0 }
   0x4   :  { %16 = vsyncpa [#allocation4 + $0x1], 0  ;;  %s941_s18 = smov 0   ;;  %s943_s19 = smov 0  }
   0x5   :  { %s945_s20 = smov 0   ;;  %s947_s21 = smov 0  }
   0x6 LB: > { %s962_s22 = sadd.s32 4294967295, %s903_s21   ;;  %s565_s23 = sadd.s32 4294967294, %s903_s21   ;;  %s903_s21 = sphi %s947_s21, %s1115_s21   ;;  %s899_s20 = sphi %s945_s20, %s1114_s20   ;;  %s895_s19 = sphi %s943_s19, %s1113_s19   ;;  %s891_s18 = sphi %s941_s18, %s1112_s18  }
   0x7   : > { %p42_p0 = scmp.ne.s32.totalorder %s895_s19, %s891_s18  ;;  %p43_p1 = scmp.eq.s32.totalorder %s962_s22, 0 }
   0x8   : > { %p150_p2 = scmp.eq.s32.totalorder %s962_s22, 1  ;;  %p156_p3 = scmp.eq.s32.totalorder %s565_s23, 1 }
   0x9   : > { %p971_p4 = por %p43_p1, %p42_p0  ;;  %p566_p5 = scmp.ge.s32.totalorder %s903_s21, 1 }
   0xa   : > { %p976_p6 = por %p156_p3, %p42_p0  ;;  %p163_p7 = scmp.lt.s32.totalorder %s903_s21, 3 }
   0xb   : > { %s174_s28 = sshll.u32 %s1099_s1, 4  ;;  %s905_s30 = smov [#allocation5]   ;;  %s175_s28 = int_to_ptr.hbm [resolvable:$true] %s174_s28 }
   0xc   : > { %p984_p8 = pnand %p566_p5, %p163_p7  ;;  %s176_s6 = sshll.u32 %s905_s30, 4  ;;  %s177_s6 = int_to_ptr.vmem [resolvable:$true] %s176_s6 }
   0xd   : > { %s191_s9 = sshll.u32 %s1101_s3, 4  ;;  %s1104_s10 = smov 64   ;;  %s192_s9 = int_to_ptr.hbm [resolvable:$true] %s191_s9 }
   0xe   : > { %p682_p9 = pneg %p984_p8  ;;  %s907_s11 = smov 4  }
   0xf   : > { %s908_s12 = smov [#allocation7]   ;;  %s1003_s14 = sadd.s32 1, %s903_s21  }
  0x10   : > { %p683_p10 = pnand %p682_p9, %p43_p1  ;;  %s193_s13 = sshll.u32 %s908_s12, 4  ;;  %s194_s13 = int_to_ptr.vmem [resolvable:$true] %s193_s13 }
  0x11   : > { %s29_s15 = sadd.s32 1, %s899_s20  ;;  %s26_s16 = ssub.s32 %s903_s21, %s1003_s14 }
  0x12   : > { %685 = dma.hbm_to_vmem [thread:$0]  (!%p683_p10), %s175_s28, 1024, %s177_s6, [#allocation6], %s1104_s10, %s1104_s10, %s907_s11  }
  0x13   : > { %688 = dma.hbm_to_vmem [thread:$0]  (!%p683_p10), %s192_s9, 1024, %s194_s13, [#allocation6], %s1104_s10, %s1104_s10, %s907_s11  }
  0x14   : > { %p36_p12 = scmp.ne.s32.totalorder %s899_s20, %s895_s19  ;;  %p27_p13 = scmp.eq.s32.totalorder %s26_s16, 0 }
  0x15   : > { %p37_p0 = scmp.eq.s32.totalorder %s903_s21, 0  ;;  %p699_p5 = scmp.lt.s32.totalorder %s903_s21, 2 }
  0x16   : > { %p1013_p3 = por %p150_p2, %p36_p12  ;;  %s210_s26 = sand.u32 1, %s899_s20  }
  0x17   : > { %s1019_s23 = scalar_select %p27_p13, %s899_s20, %s29_s15  }
  0x18   : > { %p38_p7 = por %p37_p0, %p36_p12  ;;  %s570_s27 = sshll.u32 %s210_s26, 3 }
  0x19   : > { %s651_s28 = sshll.u32 %s903_s21, 3  ;;  %s214_s8 = scalar_lea.vmem [#allocation2], %s570_s27 }
  0x1a   : > { %s219_s7 = scalar_lea.hbm %s1098_s0, %s651_s28  ;;  %s222_s9 = sshll.u32 %s214_s8, 4  ;;  %s223_s9 = int_to_ptr.vmem [resolvable:$true] %s222_s9 }
  0x1b   : > { %s220_s12 = sshll.u32 %s219_s7, 4  ;;  %p1026_p2 = pnand %p699_p5, %p38_p7  ;;  %s221_s12 = int_to_ptr.hbm [resolvable:$true] %s220_s12 }
  0x1c   : > { %s211_s15 = scalar_lea.sflag [#allocation3], %s210_s26  ;;  %s803_s16 = sshra.s32 %s221_s12, 4  ;;  %s804_s16 = int_to_ptr.hbm [resolvable:$true] %s803_s16 }
  0x1d   : > { %s805_s10 = scalar_lea.hbm %s804_s16, 8  ;;  %p807_p10 = pneg %p1026_p2 }
  0x1e   : > { %p806_p9 = scmp.ne.s32.totalorder %s804_s16, %s805_s10  ;;  %s810_s30 = scalar_lea.hbm %s1098_s0, 16 }
  0x1f   : > { %p811_p0 = scmp.lt.s32.totalorder %s804_s16, %s1098_s0  ;;  %p812_p5 = scmp.lt.s32.totalorder %s810_s30, %s805_s10 }
  0x20   : > { %p808_p12 = pnand %p807_p10, %p806_p9 }
  0x21   : > { %p813_p7 = por %p812_p5, %p811_p0 }
  0x22   : > { %p809_p13 = pneg %p808_p12 }
  0x24   : > { %p814_p11 = pnand %p813_p7, %p809_p13 }
  0x26   : > { %817 = shalt.err (!%p814_p11)
}
  0x27   : > { %s1110_s26 = smov 64   ;;  %234 = sbr.rel (%p984_p8) target bundleno = 359 (0x167), region = 40 }
  0x28   : > { %692 = dma.hbm_to_vmem [thread:$0]  (!%p1026_p2), %s221_s12, 128, %s223_s9, %s211_s15, %s1110_s26, %s1110_s26, %s907_s11  }
  0x29   : > { %s1046_s8 = sand.u32 (!%p984_p8), 1, %s895_s19  }
  0x2a   : > { %s574_s16 = sshll.u32 (!%p984_p8), %s1046_s8, 3  ;;  %s237_s10 = scalar_lea.sflag (!%p984_p8), [#allocation3], %s1046_s8 }
  0x2b   : > { %s240_s28 = scalar_lea.vmem (!%p984_p8), [#allocation2], %s574_s16 }
  0x2c   : > { %878 = dma.done.wait (%p971_p4), %s237_s10, 128  }
  0x2d   : > { %880 = vsyncadd (%p971_p4), %s237_s10, 4294967168 }
  0x2e   : > { %882 = dma.done.wait (%p43_p1), [#allocation6], 2048  }
  0x2f   : > { %884 = vsyncadd (%p43_p1), [#allocation6], 4294965248  ;;  %v660_v0 = vld [vmem:[#allocation5 + $0x38] sm:$0xff]  ;;  %v659_v1 = vld [vmem:[#allocation5 + $0x30] sm:$0xff]  ;;  %s577_s11 = sshll.u32 %s1046_s8, 4  ;;  %s669_s13 = sshll.u32 %s962_s22, 4 }
  0x30   : > { %356 = vmatpush.bf16.msra.mxu0 %v660_v0  ;;  %v668_v2 = vld [vmem:[#allocation7 + $0x38] sm:$0xff]  ;;  %v667_v3 = vld [vmem:[#allocation7 + $0x30] sm:$0xff]  ;;  %v658_v4 = vld [vmem:[#allocation5 + $0x28] sm:$0xff]  ;;  %s469_s30 = scalar_lea.hbm %s1103_s5, %s669_s13  ;;  %s277_s6 = scalar_lea.vmem [#allocation8], %s577_s11 }
  0x31   : > { %441 = vmatpush.bf16.msra.mxu1 %v668_v2  ;;  %v666_v5 = vld [vmem:[#allocation7 + $0x28] sm:$0xff]  ;;  %v657_v6 = vld [vmem:[#allocation5 + $0x20] sm:$0xff]  ;;  %v656_v8 = vld [vmem:[#allocation5 + $0x18] sm:$0xff]  ;;  %s470_s7 = sshll.u32 %s277_s6, 4  ;;  %s472_s26 = sshll.u32 %s469_s30, 4  ;;  %s471_s7 = int_to_ptr.vmem [resolvable:$true] %s470_s7  ;;  %s473_s26 = int_to_ptr.hbm [resolvable:$true] %s472_s26 }
  0x32   : > { %v665_v7 = vld [vmem:[#allocation7 + $0x20] sm:$0xff]  ;;  %v655_v9 = vld [vmem:[#allocation5 + $0x10] sm:$0xff]  ;;  %v654_v10 = vld [vmem:[#allocation5 + $0x8] sm:$0xff]  ;;  %s458_s16 = scalar_lea.sflag [#allocation4], %s1046_s8  ;;  %s847_s10 = sshra.s32 %s473_s26, 4  ;;  %s848_s10 = int_to_ptr.hbm [resolvable:$true] %s847_s10 }
  0x33   : > { %v653_v11 = vld [vmem:[#allocation5] sm:$0xff]  ;;  %v652_v12 = vld [vmem:[%s240_s28] sm:$0xff]  ;;  %v662_v15 = vld [vmem:[#allocation7 + $0x8] sm:$0xff]  ;;  %s849_s22 = scalar_lea.hbm %s848_s10, 16  ;;  %s853_s29 = scalar_lea.hbm %s1103_s5, 32 }
  0x34   : > { %357 = vmatpush.bf16.msra.mxu0 %v659_v1  ;;  %v664_v13 = vld [vmem:[#allocation7 + $0x18] sm:$0xff]  ;;  %v663_v14 = vld [vmem:[#allocation7 + $0x10] sm:$0xff]  ;;  %v661_v16 = vld [vmem:[#allocation7] sm:$0xff]  ;;  %p850_p1 = scmp.ne.s32.totalorder %s848_s10, %s849_s22  ;;  %p854_p11 = scmp.lt.s32.totalorder %s848_s10, %s1103_s5 }
  0x35   : > { %442 = vmatpush.bf16.msra.mxu1 %v667_v3  ;;  %v741_v18 = vld [vmem:[%s1100_s2] ss:$0 sm:$0xff]  ;;  %p855_p2 = scmp.lt.s32.totalorder %s853_s29, %s849_s22 }
  0x36   : > { %v742_v25 = vld [vmem:[%s1102_s4] ss:$0 sm:$0xff]  ;;  %p851_p4 = pnand %p850_p1, %p1013_p3 }
  0x37   : > { %p856_p9 = por %p855_p2, %p854_p11 }
  0x38   : > { %358 = vmatpush.bf16.msra.mxu0 %v658_v4  ;;  %p852_p8 = pneg %p851_p4 }
  0x39   : > { %443 = vmatpush.bf16.msra.mxu1 %v666_v5 }
  0x3a   : > { %p857_p10 = pnand %p856_p9, %p852_p8 }
  0x3c   : > { %359 = vmatpush.bf16.msra.mxu0 %v657_v6 }
  0x3d   : > { %444 = vmatpush.bf16.msra.mxu1 %v665_v7 }
  0x40   : > { %360 = vmatpush.bf16.msra.mxu0 %v656_v8 }
  0x41   : > { %445 = vmatpush.bf16.msra.mxu1 %v664_v13 }
  0x44   : > { %361 = vmatpush.bf16.msra.mxu0 %v655_v9 }
  0x45   : > { %446 = vmatpush.bf16.msra.mxu1 %v663_v14 }
  0x48   : > { %362 = vmatpush.bf16.msra.mxu0 %v654_v10 }
  0x49   : > { %447 = vmatpush.bf16.msra.mxu1 %v662_v15 }
  0x4c   : > { %363 = vmatpush.bf16.msra.mxu0 %v653_v11 }
  0x4d   : > { %448 = vmatpush.bf16.msra.mxu1 %v661_v16 }
  0x4f   : > { %364 = vmatmul.bf16.vlgmr.msra.gmra.mxu0 %v652_v12 }
  0xcc   : > { %v365_v17 = vpop.f32.mrf.mxu0 }
  0xcd   : > { %v366_v19 = vadd.f32 %v741_v18, %v365_v17 }
  0xcf   : > { %v370_v22 = vmax.f32 %v366_v19, 0.0 }
  0xd4   : > { %v367_v20 = vpop.f32.mrf.mxu0 }
  0xd5   : > { %v368_v21 = vadd.f32 %v741_v18, %v367_v20 }
  0xd7   : > { %v371_v23 = vmax.f32 %v368_v21, 0.0 }
  0xd9   : > { %v372_v24 = vpack.c.bf16 %v371_v23, %v370_v22 }
  0xdb   : > { %449 = vmatmul.bf16.vlgmr.msra.gmra.mxu1 %v372_v24 }
 0x158   : > { %v450_v26 = vpop.f32.mrf.mxu1 }
 0x159   : > { %v451_v27 = vadd.f32 %v742_v25, %v450_v26 }
 0x15b   : > { %455 = vst [vmem:[%s277_s6] sm:$0xff] %v451_v27 }
 0x160   : > { %v452_v28 = vpop.f32.mrf.mxu1 }
 0x161   : > { %v453_v29 = vadd.f32 %v742_v25, %v452_v28 }
 0x163   : > { %456 = vst [vmem:[%s277_s6 + $0x8] sm:$0xff] %v453_v29 }
 0x164   : > { %860 = shalt.err (!%p857_p10)
}
 0x165   : > { %s909_s8 = smov 128   ;;  %s910_s12 = smov 8  }
 0x166   : > { %680 = dma.vmem_to_hbm [thread:$0]  (%p1013_p3), %s471_s7, 256, %s473_s26, %s458_s16, %s909_s8, %s909_s8, %s910_s12  }
 0x167 PF: > { %s487_s13 = sand.u32 1, %s891_s18   ;;  %p1111_p12 = scmp.ge.s32.totalorder %s903_s21, 2 }
 0x168   : > { %s488_s15 = scalar_lea.sflag [#allocation4], %s487_s13 }
 0x169   : > { %p694_p13 = pnand %p1111_p12, %p976_p6 }
 0x16b   : > { %p695_p0 = pneg %p694_p13 }
 0x16d   : > { %886 = dma.done.wait (%p695_p0), %s488_s15, 256  }
 0x16e   : > { %888 = vsyncadd (%p695_p0), %s488_s15, 4294967040  ;;  %p19_p5 = scmp.ge.s32.totalorder %s1003_s14, 4   ;;  %s1112_s18 = smov %s895_s19 }
 0x16f   : > { %s1113_s19 = smov %s899_s20  ;;  %s1114_s20 = smov %s1019_s23 }
 0x170   : > { %s1115_s21 = smov %s1003_s14  ;;  %21 = sbr.rel (!%p19_p5) target bundleno = 6 (0x6), region = 93 }
 0x175   :  { %494 = vsyncpa [#allocation3], 1 }
 0x176   :  { %496 = vsyncpa [#allocation3 + $0x1], 1 }
 0x177   :  { %497 = vsyncpa [#allocation6], 1 }
 0x178   :  { %498 = vsyncpa [#allocation4], 1 }
 0x179   :  { %500 = vsyncpa [#allocation4 + $0x1], 1 }

// kernel: tpu_custom_call.1
= control target key start
LH: loop header
LB: loop body
LE: loop exit
PB: predicated region body
PF: predicated region fallthrough
CT: control target
= control target key end

     0   :  { %10 = vsyncpa [#allocation3], 0  ;;  %s1098_s0 = inlined_call_operand.hbm [shape: bf16[32,128], index: 0, kind: input, shape index: {}]   ;;  %s1099_s1 = inlined_call_operand.hbm [shape: bf16[128,128], index: 1, kind: input, shape index: {}]   ;;  %s1100_s2 = inlined_call_operand.vmem [shape: f32[1,128], index: 2, kind: input, shape index: {}]   ;;  %s1101_s3 = inlined_call_operand.hbm [shape: bf16[128,128], index: 3, kind: input, shape index: {}]   ;;  %s1102_s4 = inlined_call_operand.vmem [shape: f32[1,128], index: 4, kind: input, shape index: {}]   ;;  %s1103_s5 = inlined_call_operand.hbm [shape: f32[32,128], index: 5, kind: output, shape index: {}]  }
   0x1   :  { %12 = vsyncpa [#allocation3 + $0x1], 0 }
   0x2   :  { %13 = vsyncpa [#allocation6], 0 }
   0x3   :  { %14 = vsyncpa [#allocation4], 0 }
   0x4   :  { %16 = vsyncpa [#allocation4 + $0x1], 0  ;;  %s941_s18 = smov 0   ;;  %s943_s19 = smov 0  }
   0x5   :  { %s945_s20 = smov 0   ;;  %s947_s21 = smov 0  }
   0x6 LB: > { %s962_s22 = sadd.s32 4294967295, %s903_s21   ;;  %s565_s23 = sadd.s32 4294967294, %s903_s21   ;;  %s903_s21 = sphi %s947_s21, %s1115_s21   ;;  %s899_s20 = sphi %s945_s20, %s1114_s20   ;;  %s895_s19 = sphi %s943_s19, %s1113_s19   ;;  %s891_s18 = sphi %s941_s18, %s1112_s18  }
   0x7   : > { %p42_p0 = scmp.ne.s32.totalorder %s895_s19, %s891_s18  ;;  %p43_p1 = scmp.eq.s32.totalorder %s962_s22, 0 }
   0x8   : > { %p150_p2 = scmp.eq.s32.totalorder %s962_s22, 1  ;;  %p156_p3 = scmp.eq.s32.totalorder %s565_s23, 1 }
   0x9   : > { %p971_p4 = por %p43_p1, %p42_p0  ;;  %p566_p5 = scmp.ge.s32.totalorder %s903_s21, 1 }
   0xa   : > { %p976_p6 = por %p156_p3, %p42_p0  ;;  %p163_p7 = scmp.lt.s32.totalorder %s903_s21, 3 }
   0xb   : > { %s174_s28 = sshll.u32 %s1099_s1, 4  ;;  %s905_s30 = smov [#allocation5]   ;;  %s175_s28 = int_to_ptr.hbm [resolvable:$true] %s174_s28 }
   0xc   : > { %p984_p8 = pnand %p566_p5, %p163_p7  ;;  %s176_s6 = sshll.u32 %s905_s30, 4  ;;  %s177_s6 = int_to_ptr.vmem [resolvable:$true] %s176_s6 }
   0xd   : > { %s191_s9 = sshll.u32 %s1101_s3, 4  ;;  %s1104_s10 = smov 64   ;;  %s192_s9 = int_to_ptr.hbm [resolvable:$true] %s191_s9 }
   0xe   : > { %p682_p9 = pneg %p984_p8  ;;  %s907_s11 = smov 4  }
   0xf   : > { %s908_s12 = smov [#allocation7]   ;;  %s1003_s14 = sadd.s32 1, %s903_s21  }
  0x10   : > { %p683_p10 = pnand %p682_p9, %p43_p1  ;;  %s193_s13 = sshll.u32 %s908_s12, 4  ;;  %s194_s13 = int_to_ptr.vmem [resolvable:$true] %s193_s13 }
  0x11   : > { %s29_s15 = sadd.s32 1, %s899_s20  ;;  %s26_s16 = ssub.s32 %s903_s21, %s1003_s14 }
  0x12   : > { %685 = dma.hbm_to_vmem [thread:$0]  (!%p683_p10), %s175_s28, 1024, %s177_s6, [#allocation6], %s1104_s10, %s1104_s10, %s907_s11  }
  0x13   : > { %688 = dma.hbm_to_vmem [thread:$0]  (!%p683_p10), %s192_s9, 1024, %s194_s13, [#allocation6], %s1104_s10, %s1104_s10, %s907_s11  }
  0x14   : > { %p36_p12 = scmp.ne.s32.totalorder %s899_s20, %s895_s19  ;;  %p27_p13 = scmp.eq.s32.totalorder %s26_s16, 0 }
  0x15   : > { %p37_p0 = scmp.eq.s32.totalorder %s903_s21, 0  ;;  %p699_p5 = scmp.lt.s32.totalorder %s903_s21, 2 }
  0x16   : > { %p1013_p3 = por %p150_p2, %p36_p12  ;;  %s210_s26 = sand.u32 1, %s899_s20  }
  0x17   : > { %s1019_s23 = scalar_select %p27_p13, %s899_s20, %s29_s15  }
  0x18   : > { %p38_p7 = por %p37_p0, %p36_p12  ;;  %s570_s27 = sshll.u32 %s210_s26, 3 }
  0x19   : > { %s651_s28 = sshll.u32 %s903_s21, 3  ;;  %s214_s8 = scalar_lea.vmem [#allocation2], %s570_s27 }
  0x1a   : > { %s219_s7 = scalar_lea.hbm %s1098_s0, %s651_s28  ;;  %s222_s9 = sshll.u32 %s214_s8, 4  ;;  %s223_s9 = int_to_ptr.vmem [resolvable:$true] %s222_s9 }
  0x1b   : > { %s220_s12 = sshll.u32 %s219_s7, 4  ;;  %p1026_p2 = pnand %p699_p5, %p38_p7  ;;  %s221_s12 = int_to_ptr.hbm [resolvable:$true] %s220_s12 }
  0x1c   : > { %s211_s15 = scalar_lea.sflag [#allocation3], %s210_s26  ;;  %s803_s16 = sshra.s32 %s221_s12, 4  ;;  %s804_s16 = int_to_ptr.hbm [resolvable:$true] %s803_s16 }
  0x1d   : > { %s805_s10 = scalar_lea.hbm %s804_s16, 8  ;;  %p807_p10 = pneg %p1026_p2 }
  0x1e   : > { %p806_p9 = scmp.ne.s32.totalorder %s804_s16, %s805_s10  ;;  %s810_s30 = scalar_lea.hbm %s1098_s0, 16 }
  0x1f   : > { %p811_p0 = scmp.lt.s32.totalorder %s804_s16, %s1098_s0  ;;  %p812_p5 = scmp.lt.s32.totalorder %s810_s30, %s805_s10 }
  0x20   : > { %p808_p12 = pnand %p807_p10, %p806_p9 }
  0x21   : > { %p813_p7 = por %p812_p5, %p811_p0 }
  0x22   : > { %p809_p13 = pneg %p808_p12 }
  0x24   : > { %p814_p11 = pnand %p813_p7, %p809_p13 }
  0x26   : > { %817 = shalt.err (!%p814_p11)
}
  0x27   : > { %s1110_s26 = smov 64   ;;  %234 = sbr.rel (%p984_p8) target bundleno = 359 (0x167), region = 40 }
  0x28   : > { %692 = dma.hbm_to_vmem [thread:$0]  (!%p1026_p2), %s221_s12, 128, %s223_s9, %s211_s15, %s1110_s26, %s1110_s26, %s907_s11  }
  0x29   : > { %s1046_s8 = sand.u32 (!%p984_p8), 1, %s895_s19  }
  0x2a   : > { %s574_s16 = sshll.u32 (!%p984_p8), %s1046_s8, 3  ;;  %s237_s10 = scalar_lea.sflag (!%p984_p8), [#allocation3], %s1046_s8 }
  0x2b   : > { %s240_s28 = scalar_lea.vmem (!%p984_p8), [#allocation2], %s574_s16 }
  0x2c   : > { %878 = dma.done.wait (%p971_p4), %s237_s10, 128  }
  0x2d   : > { %880 = vsyncadd (%p971_p4), %s237_s10, 4294967168 }
  0x2e   : > { %882 = dma.done.wait (%p43_p1), [#allocation6], 2048  }
  0x2f   : > { %884 = vsyncadd (%p43_p1), [#allocation6], 4294965248  ;;  %v660_v0 = vld [vmem:[#allocation5 + $0x38] sm:$0xff]  ;;  %v659_v1 = vld [vmem:[#allocation5 + $0x30] sm:$0xff]  ;;  %s577_s11 = sshll.u32 %s1046_s8, 4  ;;  %s669_s13 = sshll.u32 %s962_s22, 4 }
  0x30   : > { %356 = vmatpush.bf16.msra.mxu0 %v660_v0  ;;  %v668_v2 = vld [vmem:[#allocation7 + $0x38] sm:$0xff]  ;;  %v667_v3 = vld [vmem:[#allocation7 + $0x30] sm:$0xff]  ;;  %v658_v4 = vld [vmem:[#allocation5 + $0x28] sm:$0xff]  ;;  %s469_s30 = scalar_lea.hbm %s1103_s5, %s669_s13  ;;  %s277_s6 = scalar_lea.vmem [#allocation8], %s577_s11 }
  0x31   : > { %441 = vmatpush.bf16.msra.mxu1 %v668_v2  ;;  %v666_v5 = vld [vmem:[#allocation7 + $0x28] sm:$0xff]  ;;  %v657_v6 = vld [vmem:[#allocation5 + $0x20] sm:$0xff]  ;;  %v656_v8 = vld [vmem:[#allocation5 + $0x18] sm:$0xff]  ;;  %s470_s7 = sshll.u32 %s277_s6, 4  ;;  %s472_s26 = sshll.u32 %s469_s30, 4  ;;  %s471_s7 = int_to_ptr.vmem [resolvable:$true] %s470_s7  ;;  %s473_s26 = int_to_ptr.hbm [resolvable:$true] %s472_s26 }
  0x32   : > { %v665_v7 = vld [vmem:[#allocation7 + $0x20] sm:$0xff]  ;;  %v655_v9 = vld [vmem:[#allocation5 + $0x10] sm:$0xff]  ;;  %v654_v10 = vld [vmem:[#allocation5 + $0x8] sm:$0xff]  ;;  %s458_s16 = scalar_lea.sflag [#allocation4], %s1046_s8  ;;  %s847_s10 = sshra.s32 %s473_s26, 4  ;;  %s848_s10 = int_to_ptr.hbm [resolvable:$true] %s847_s10 }
  0x33   : > { %v653_v11 = vld [vmem:[#allocation5] sm:$0xff]  ;;  %v652_v12 = vld [vmem:[%s240_s28] sm:$0xff]  ;;  %v662_v15 = vld [vmem:[#allocation7 + $0x8] sm:$0xff]  ;;  %s849_s22 = scalar_lea.hbm %s848_s10, 16  ;;  %s853_s29 = scalar_lea.hbm %s1103_s5, 32 }
  0x34   : > { %357 = vmatpush.bf16.msra.mxu0 %v659_v1  ;;  %v664_v13 = vld [vmem:[#allocation7 + $0x18] sm:$0xff]  ;;  %v663_v14 = vld [vmem:[#allocation7 + $0x10] sm:$0xff]  ;;  %v661_v16 = vld [vmem:[#allocation7] sm:$0xff]  ;;  %p850_p1 = scmp.ne.s32.totalorder %s848_s10, %s849_s22  ;;  %p854_p11 = scmp.lt.s32.totalorder %s848_s10, %s1103_s5 }
  0x35   : > { %442 = vmatpush.bf16.msra.mxu1 %v667_v3  ;;  %v741_v18 = vld [vmem:[%s1100_s2] ss:$0 sm:$0xff]  ;;  %p855_p2 = scmp.lt.s32.totalorder %s853_s29, %s849_s22 }
  0x36   : > { %v742_v25 = vld [vmem:[%s1102_s4] ss:$0 sm:$0xff]  ;;  %p851_p4 = pnand %p850_p1, %p1013_p3 }
  0x37   : > { %p856_p9 = por %p855_p2, %p854_p11 }
  0x38   : > { %358 = vmatpush.bf16.msra.mxu0 %v658_v4  ;;  %p852_p8 = pneg %p851_p4 }
  0x39   : > { %443 = vmatpush.bf16.msra.mxu1 %v666_v5 }
  0x3a   : > { %p857_p10 = pnand %p856_p9, %p852_p8 }
  0x3c   : > { %359 = vmatpush.bf16.msra.mxu0 %v657_v6 }
  0x3d   : > { %444 = vmatpush.bf16.msra.mxu1 %v665_v7 }
  0x40   : > { %360 = vmatpush.bf16.msra.mxu0 %v656_v8 }
  0x41   : > { %445 = vmatpush.bf16.msra.mxu1 %v664_v13 }
  0x44   : > { %361 = vmatpush.bf16.msra.mxu0 %v655_v9 }
  0x45   : > { %446 = vmatpush.bf16.msra.mxu1 %v663_v14 }
  0x48   : > { %362 = vmatpush.bf16.msra.mxu0 %v654_v10 }
  0x49   : > { %447 = vmatpush.bf16.msra.mxu1 %v662_v15 }
  0x4c   : > { %363 = vmatpush.bf16.msra.mxu0 %v653_v11 }
  0x4d   : > { %448 = vmatpush.bf16.msra.mxu1 %v661_v16 }
  0x4f   : > { %364 = vmatmul.bf16.vlgmr.msra.gmra.mxu0 %v652_v12 }
  0xcc   : > { %v365_v17 = vpop.f32.mrf.mxu0 }
  0xcd   : > { %v366_v19 = vadd.f32 %v741_v18, %v365_v17 }
  0xcf   : > { %v370_v22 = vmax.f32 %v366_v19, 0.0 }
  0xd4   : > { %v367_v20 = vpop.f32.mrf.mxu0 }
  0xd5   : > { %v368_v21 = vadd.f32 %v741_v18, %v367_v20 }
  0xd7   : > { %v371_v23 = vmax.f32 %v368_v21, 0.0 }
  0xd9   : > { %v372_v24 = vpack.c.bf16 %v371_v23, %v370_v22 }
  0xdb   : > { %449 = vmatmul.bf16.vlgmr.msra.gmra.mxu1 %v372_v24 }
 0x158   : > { %v450_v26 = vpop.f32.mrf.mxu1 }
 0x159   : > { %v451_v27 = vadd.f32 %v742_v25, %v450_v26 }
 0x15b   : > { %455 = vst [vmem:[%s277_s6] sm:$0xff] %v451_v27 }
 0x160   : > { %v452_v28 = vpop.f32.mrf.mxu1 }
 0x161   : > { %v453_v29 = vadd.f32 %v742_v25, %v452_v28 }
 0x163   : > { %456 = vst [vmem:[%s277_s6 + $0x8] sm:$0xff] %v453_v29 }
 0x164   : > { %860 = shalt.err (!%p857_p10)
}
 0x165   : > { %s909_s8 = smov 128   ;;  %s910_s12 = smov 8  }
 0x166   : > { %680 = dma.vmem_to_hbm [thread:$0]  (%p1013_p3), %s471_s7, 256, %s473_s26, %s458_s16, %s909_s8, %s909_s8, %s910_s12  }
 0x167 PF: > { %s487_s13 = sand.u32 1, %s891_s18   ;;  %p1111_p12 = scmp.ge.s32.totalorder %s903_s21, 2 }
 0x168   : > { %s488_s15 = scalar_lea.sflag [#allocation4], %s487_s13 }
 0x169   : > { %p694_p13 = pnand %p1111_p12, %p976_p6 }
 0x16b   : > { %p695_p0 = pneg %p694_p13 }
 0x16d   : > { %886 = dma.done.wait (%p695_p0), %s488_s15, 256  }
 0x16e   : > { %888 = vsyncadd (%p695_p0), %s488_s15, 4294967040  ;;  %p19_p5 = scmp.ge.s32.totalorder %s1003_s14, 4   ;;  %s1112_s18 = smov %s895_s19 }
 0x16f   : > { %s1113_s19 = smov %s899_s20  ;;  %s1114_s20 = smov %s1019_s23 }
 0x170   : > { %s1115_s21 = smov %s1003_s14  ;;  %21 = sbr.rel (!%p19_p5) target bundleno = 6 (0x6), region = 93 }
 0x175   :  { %494 = vsyncpa [#allocation3], 1 }
 0x176   :  { %496 = vsyncpa [#allocation3 + $0x1], 1 }
 0x177   :  { %497 = vsyncpa [#allocation6], 1 }
 0x178   :  { %498 = vsyncpa [#allocation4], 1 }
 0x179   :  { %500 = vsyncpa [#allocation4 + $0x1], 1 }

</bundles_post_ra>
